<compile_context>
chip_gen: v7x
topology: tpu7x:2x2x1
jax: 0.10.0
libtpu: 0.0.40
codegen_flags: <defaults>
</compile_context>

<pallas_src>
import jax
import jax.numpy as jnp
from jax import lax
from jax.experimental import pallas as pl
from jax.experimental.pallas import tpu as pltpu


_SINGLE_TC_KINDS = ("v5e", "v5 lite", "v5litepod", "v6e", "v6 lite", "v6litepod")


def _pick_time_block(T):
    """grid=(1,) on single-TC chips (v5e/v6e); >=2 parallel grid steps on megacore (v7x)."""
    try:
        kind = jax.devices()[0].device_kind.lower()
    except Exception:
        kind = ""
    single_tc = any(s in kind for s in _SINGLE_TC_KINDS)
    if single_tc or T < 2:
        return max(T, 1)
    for d in range(T // 2, 0, -1):      # largest divisor of T leaving >= 2 grid steps
        if T % d == 0:
            return d
    return max(T, 1)


def _make_dagcn_kernel(TB, N, K, I, B, O):
    NO = N * O
    KNO = K * NO

    def kernel(x_ref, sx_ref, th_ref, b_ref, out_ref):
        # 0/1 selection matrix for the i-reduction (keep b), generated in-kernel and
        # hoisted out of the time loop: r2[b, i*B + b'] = 1 iff b == b'.
        r2 = (lax.broadcasted_iota(jnp.int32, (B, I * B), 0)
              == lax.broadcasted_iota(jnp.int32, (B, I * B), 1) % B).astype(jnp.float32)

        ys = []
        for tt in range(TB):                                  # static unroll, TB is small
            Xib = x_ref[tt]                                   # (I*B, N)
            Sx = sx_ref[tt]                                   # (N, K*N*O) lane-expanded Cheb set
            Th = th_ref[tt]                                   # (I*B, K*N*O)
            Bd = b_ref[tt]                                    # (1, N*O)

            # One wide MXU matmul fuses the whole k-loop:
            #   A[(i,b), k*NO + n*O + o] = x_g[b, t, k, n, i]
            A = jnp.dot(Xib, Sx, preferred_element_type=jnp.float32)      # (I*B, K*NO)
            term = A * Th                                                 # * theta[t,n,k,i,o]

            # k-fold via K-1 lane-aligned VPU adds on 128-lane slices.
            red = term[:, 0:NO]
            for k in range(1, K):
                red = red + term[:, k * NO:(k + 1) * NO]                  # (I*B, NO)

            # i-reduction (keep b) as a tiny selection matmul; add bias; final ReLU.
            y = jnp.dot(r2, red, preferred_element_type=jnp.float32) + Bd  # (B, NO)
            ys.append(jnp.maximum(y, 0.0))

        # Single lane-dense store per grid step: (TB*B, NO) = full (8,128) tiles at demo sizes.
        out_ref[0] = jnp.concatenate(ys, axis=0) if TB > 1 else ys[0]

    return kernel


def dagcn_reduce_forward(x, dn_embeddings, weights_pool, bias_pool, cheb_k,
                         spatial_attention=True, time_block=None):
    """Pallas implementation of DAGCN(mode='reduce').forward (+ final ReLU)."""
    x = x.astype(jnp.float32)
    E = dn_embeddings.astype(jnp.float32)
    W = weights_pool.astype(jnp.float32)
    Bp = bias_pool.astype(jnp.float32)

    B, T, N, C = x.shape
    Te, Ne, D = E.shape
    Tw, Dw, K, I, O = W.shape
    assert (T, N) == (Te, Ne) and (T, D) == (Tw, Dw) and C == I and K == cheb_k
    assert K >= 2, "cheb_k must be >= 2 (the PyTorch reference always stacks eye + supports)"

    NO = N * O
    TB = time_block if time_block is not None else _pick_time_block(T)
    assert T % TB == 0
    G = T // TB

    # ---- embedding-only precompute hoisted to XLA (does not depend on x) ----
    logits = jnp.einsum('tne,tse->tns', E, E)
    S = jax.nn.softmax(jax.nn.relu(logits), axis=-1)                       # (T, N, N)
    eye = jnp.broadcast_to(jnp.eye(N, dtype=jnp.float32), (T, N, N))
    sup_list = [eye, S]
    if K > 2:
        # PyTorch einsum('tnn,tns->tns', 2*S, prev): diag of 2*S broadcast along s.
        d = 2.0 * jnp.diagonal(S, axis1=-2, axis2=-1)                      # (T, N)
        for _ in range(2, K):
            sup_list.append(d[..., None] * sup_list[-1] - sup_list[-2])
    sup = jnp.stack(sup_list, axis=1)                                      # (T, K, N, N)

    theta = jnp.einsum('tnd,tdkio->tnkio', E, W)                           # (T, N, K, I, O)
    bias = jnp.einsum('tnd,tdo->tno', E, Bp)                               # (T, N, O)

    # ---- kernel-friendly layout plumbing (done once, outside the kernel) ----
    # x_r[t, i*B + b, m] = x[b, t, m, i]
    x_r = jnp.transpose(x, (1, 3, 0, 2)).reshape(T, I * B, N)
    # supexp[t, m, k*NO + n*O + o] = sup[t, k, n, m]  (transposed + lane-expanded)
    supexp = jnp.transpose(sup, (0, 3, 1, 2))                              # (T, m, k, n)
    supexp = jnp.broadcast_to(supexp[..., None], (T, N, K, N, O)).reshape(T, N, K * NO)
    # th_r[t, i*B + b, k*NO + n*O + o] = theta[t, n, k, i, o]  (broadcast over b)
    th_r = jnp.transpose(theta, (0, 3, 2, 1, 4))                           # (T, I, K, N, O)
    th_r = jnp.broadcast_to(th_r[:, :, None], (T, I, B, K, N, O)).reshape(T, I * B, K * NO)
    bias_d = bias.reshape(T, 1, NO)

    kernel = _make_dagcn_kernel(TB=TB, N=N, K=K, I=I, B=B, O=O)

    y_flat = pl.pallas_call(
        kernel,
        grid=(G,),
        in_specs=[
            pl.BlockSpec((TB, I * B, N), lambda i: (i, 0, 0)),             # x (re-laid out)
            pl.BlockSpec((TB, N, K * NO), lambda i: (i, 0, 0)),            # lane-expanded Cheb set
            pl.BlockSpec((TB, I * B, K * NO), lambda i: (i, 0, 0)),        # theta (re-laid out)
            pl.BlockSpec((TB, 1, NO), lambda i: (i, 0, 0)),                # bias (lane-dense)
        ],
        out_specs=pl.BlockSpec((1, TB * B, NO), lambda i: (i, 0, 0)),      # lane-dense y slab
        out_shape=jax.ShapeDtypeStruct((G, TB * B, NO), jnp.float32),
        compiler_params=pltpu.CompilerParams(dimension_semantics=("parallel",)),
    )(x_r, supexp, th_r, bias_d)

    # Rows are ordered (grid step, t-within-block, b) == (t, b); undo in the wrapper.
    y = y_flat.reshape(T, B, N, O).transpose(1, 0, 2, 3)                   # (B, T, N, O)
    attn = sup if spatial_attention else None
    return y, attn


def dagcn_reference(x, dn_embeddings, weights_pool, bias_pool, cheb_k):
    """Pure-JAX replica of the PyTorch forward (for verification)."""
    T, N, _ = dn_embeddings.shape
    logits = jnp.einsum('tne,tse->tns', dn_embeddings, dn_embeddings)
    supports = jax.nn.softmax(jax.nn.relu(logits), axis=-1)
    unit = jnp.broadcast_to(jnp.eye(N, dtype=x.dtype), (T, N, N))
    support_set = [unit, supports]
    for _ in range(2, cheb_k):
        support_set.append(
            jnp.einsum('tnn,tns->tns', 2.0 * supports, support_set[-1]) - support_set[-2])
    sup = jnp.stack(support_set, axis=1)                                     # (T, K, N, N)
    theta = jnp.einsum('tnd,tdkio->tnkio', dn_embeddings, weights_pool)      # (T, N, K, I, O)
    bias = jnp.einsum('tnd,tdo->tno', dn_embeddings, bias_pool)              # (T, N, O)
    x_g = jnp.einsum('tknm,btmc->btknc', sup, x)                             # (B, T, K, N, C)
    x_gconv = jnp.einsum('btkni,tnkio->btno', x_g, theta) + bias[None]       # (B, T, N, O)
    return jax.nn.relu(x_gconv), sup


if __name__ == "__main__":
    B, T, N = 2, 8, 16
    in_dims, out_dims, cheb_k, embed_dim = 4, 8, 3, 4

    key = jax.random.PRNGKey(0)
    k1, k2, k3, k4 = jax.random.split(key, 4)
    x = jax.random.normal(k1, (B, T, N, in_dims), jnp.float32)
    dn_embeddings = jax.random.normal(k2, (T, N, embed_dim), jnp.float32)
    weights_pool = jax.random.normal(
        k3, (T, embed_dim, cheb_k, in_dims, out_dims), jnp.float32)
    bias_pool = jax.random.normal(k4, (T, embed_dim, out_dims), jnp.float32)

    ref_out, ref_sup = dagcn_reference(x, dn_embeddings, weights_pool, bias_pool, cheb_k)

    # Default (generation-sized) grid, with the supports/attention output.
    out, attn = dagcn_reduce_forward(
        x, dn_embeddings, weights_pool, bias_pool, cheb_k, spatial_attention=True)
    out = jax.block_until_ready(out)
    attn = jax.block_until_ready(attn)
    assert out.shape == (B, T, N, out_dims)
    assert attn.shape == (T, cheb_k, N, N)
    assert jnp.allclose(out, ref_out, rtol=1e-2, atol=2e-3), "output mismatch"
    assert jnp.allclose(attn, ref_sup, rtol=1e-2, atol=2e-3), "supports mismatch"

    # Single grid step (v5e/v6e-style sizing), no attention output.
    out2, attn2 = dagcn_reduce_forward(
        x, dn_embeddings, weights_pool, bias_pool, cheb_k,
        spatial_attention=False, time_block=T)
    out2 = jax.block_until_ready(out2)
    assert attn2 is None
    assert jnp.allclose(out2, ref_out, rtol=1e-2, atol=2e-3), "output mismatch (grid=1 path)"

    # Two parallel grid steps (v7x megacore-style sizing).
    out3, _ = dagcn_reduce_forward(
        x, dn_embeddings, weights_pool, bias_pool, cheb_k,
        spatial_attention=False, time_block=T // 2)
    out3 = jax.block_until_ready(out3)
    assert jnp.allclose(out3, ref_out, rtol=1e-2, atol=2e-3), "output mismatch (grid=2 path)"

    print("KERNEL_OK")
</pallas_src>

<mosaic_0001>
module attributes {stable_mosaic.version = 11 : i64} {
  func.func @kernel(%arg0: i32, %arg1: memref<4x8x16xf32, #tpu.memory_space<vmem>>, %arg2: memref<4x16x384xf32, #tpu.memory_space<vmem>>, %arg3: memref<4x8x384xf32, #tpu.memory_space<vmem>>, %arg4: memref<4x1x128xf32, #tpu.memory_space<vmem>>, %arg5: memref<1x8x128xf32, #tpu.memory_space<vmem>>) attributes {dimension_semantics = [#tpu.dimension_semantics<parallel>], iteration_bounds = array<i64: 2>, scalar_prefetch = 0 : i64, scratch_operands = 0 : i64, tpu.core_type = #tpu.core_type<tc>, window_params = [{transform_indices = @transform_0, window_bounds = array<i64: 4, 8, 16>}, {transform_indices = @transform_1, window_bounds = array<i64: 4, 16, 384>}, {transform_indices = @transform_2, window_bounds = array<i64: 4, 8, 384>}, {transform_indices = @transform_3, window_bounds = array<i64: 4, 1, 128>}, {transform_indices = @transform_4, window_bounds = array<i64: 1, 8, 128>}]} {
    %0 = tpu.iota {dimensions = array<i32: 0>} : vector<2x8xi32>
    %1 = tpu.iota {dimensions = array<i32: 1>} : vector<2x8xi32>
    %c2_i32 = arith.constant 2 : i32
    %c0_i32 = arith.constant 0 : i32
    %2 = arith.cmpi eq, %c2_i32, %c0_i32 : i32
    %c1_i32 = arith.constant 1 : i32
    %3 = arith.select %2, %c1_i32, %c2_i32 : i32
    %4 = vector.broadcast %3 : i32 to vector<2x8xi32>
    %5 = arith.remsi %1, %4 : vector<2x8xi32>
    %c0_i32_0 = arith.constant 0 : i32
    %6 = vector.broadcast %c0_i32_0 : i32 to vector<2x8xi32>
    %7 = arith.cmpi ne, %5, %6 : vector<2x8xi32>
    %c0_i32_1 = arith.constant 0 : i32
    %8 = vector.broadcast %c0_i32_1 : i32 to vector<2x8xi32>
    %9 = arith.cmpi slt, %5, %8 : vector<2x8xi32>
    %c0_i32_2 = arith.constant 0 : i32
    %10 = arith.cmpi slt, %3, %c0_i32_2 : i32
    %11 = vector.broadcast %10 : i1 to vector<2x8xi1>
    %12 = vector.broadcast %11 : vector<2x8xi1> to vector<2x8xi1>
    %13 = arith.xori %9, %12 : vector<2x8xi1>
    %14 = arith.andi %13, %7 : vector<2x8xi1>
    %15 = vector.broadcast %3 : i32 to vector<2x8xi32>
    %16 = arith.addi %5, %15 : vector<2x8xi32>
    %17 = arith.select %14, %16, %5 : vector<2x8xi1>, vector<2x8xi32>
    %18 = arith.cmpi eq, %0, %17 : vector<2x8xi32>
    %19 = arith.extui %18 : vector<2x8xi1> to vector<2x8xi32>
    %20 = arith.sitofp %19 : vector<2x8xi32> to vector<2x8xf32>
    %c0 = arith.constant 0 : index
    %c0_3 = arith.constant 0 : index
    %c0_4 = arith.constant 0 : index
    %21 = vector.load %arg1[%c0, %c0_3, %c0_4] : memref<4x8x16xf32, #tpu.memory_space<vmem>>, vector<1x8x16xf32>
    %22 = vector.shape_cast %21 : vector<1x8x16xf32> to vector<8x16xf32>
    %c0_5 = arith.constant 0 : index
    %c0_6 = arith.constant 0 : index
    %c0_7 = arith.constant 0 : index
    %23 = vector.load %arg2[%c0_5, %c0_6, %c0_7] : memref<4x16x384xf32, #tpu.memory_space<vmem>>, vector<1x16x384xf32>
    %24 = vector.shape_cast %23 : vector<1x16x384xf32> to vector<16x384xf32>
    %c0_8 = arith.constant 0 : index
    %c0_9 = arith.constant 0 : index
    %c0_10 = arith.constant 0 : index
    %25 = vector.load %arg3[%c0_8, %c0_9, %c0_10] : memref<4x8x384xf32, #tpu.memory_space<vmem>>, vector<1x8x384xf32>
    %26 = vector.shape_cast %25 : vector<1x8x384xf32> to vector<8x384xf32>
    %c0_11 = arith.constant 0 : index
    %c0_12 = arith.constant 0 : index
    %c0_13 = arith.constant 0 : index
    %27 = vector.load %arg4[%c0_11, %c0_12, %c0_13] : memref<4x1x128xf32, #tpu.memory_space<vmem>>, vector<1x1x128xf32>
    %28 = vector.shape_cast %27 : vector<1x1x128xf32> to vector<1x128xf32>
    %cst = arith.constant dense<0.000000e+00> : vector<8x384xf32>
    %29 = tpu.matmul %22, %24, %cst {dimension_numbers = #tpu.dot_dimension_numbers<[1], [0], [0], [1], [0, 0, 1, 1], [], []>} : vector<8x16xf32>, vector<16x384xf32>, vector<8x384xf32> -> vector<8x384xf32>
    %30 = arith.mulf %29, %26 : vector<8x384xf32>
    %31 = vector.extract_strided_slice %30 {offsets = [0, 0], sizes = [8, 128], strides = [1, 1]} : vector<8x384xf32> to vector<8x128xf32>
    %32 = vector.extract_strided_slice %30 {offsets = [0, 128], sizes = [8, 128], strides = [1, 1]} : vector<8x384xf32> to vector<8x128xf32>
    %33 = arith.addf %31, %32 : vector<8x128xf32>
    %34 = vector.extract_strided_slice %30 {offsets = [0, 256], sizes = [8, 128], strides = [1, 1]} : vector<8x384xf32> to vector<8x128xf32>
    %35 = arith.addf %33, %34 : vector<8x128xf32>
    %cst_14 = arith.constant dense<0.000000e+00> : vector<2x128xf32>
    %36 = tpu.matmul %20, %35, %cst_14 {dimension_numbers = #tpu.dot_dimension_numbers<[1], [0], [0], [1], [0, 0, 1, 1], [], []>} : vector<2x8xf32>, vector<8x128xf32>, vector<2x128xf32> -> vector<2x128xf32>
    %37 = vector.broadcast %28 : vector<1x128xf32> to vector<2x128xf32>
    %38 = arith.addf %36, %37 : vector<2x128xf32>
    %cst_15 = arith.constant 0.000000e+00 : f32
    %39 = vector.broadcast %cst_15 : f32 to vector<2x128xf32>
    %40 = arith.maximumf %38, %39 : vector<2x128xf32>
    %c1 = arith.constant 1 : index
    %c0_16 = arith.constant 0 : index
    %c0_17 = arith.constant 0 : index
    %41 = vector.load %arg1[%c1, %c0_16, %c0_17] : memref<4x8x16xf32, #tpu.memory_space<vmem>>, vector<1x8x16xf32>
    %42 = vector.shape_cast %41 : vector<1x8x16xf32> to vector<8x16xf32>
    %c1_18 = arith.constant 1 : index
    %c0_19 = arith.constant 0 : index
    %c0_20 = arith.constant 0 : index
    %43 = vector.load %arg2[%c1_18, %c0_19, %c0_20] : memref<4x16x384xf32, #tpu.memory_space<vmem>>, vector<1x16x384xf32>
    %44 = vector.shape_cast %43 : vector<1x16x384xf32> to vector<16x384xf32>
    %c1_21 = arith.constant 1 : index
    %c0_22 = arith.constant 0 : index
    %c0_23 = arith.constant 0 : index
    %45 = vector.load %arg3[%c1_21, %c0_22, %c0_23] : memref<4x8x384xf32, #tpu.memory_space<vmem>>, vector<1x8x384xf32>
    %46 = vector.shape_cast %45 : vector<1x8x384xf32> to vector<8x384xf32>
    %c1_24 = arith.constant 1 : index
    %c0_25 = arith.constant 0 : index
    %c0_26 = arith.constant 0 : index
    %47 = vector.load %arg4[%c1_24, %c0_25, %c0_26] : memref<4x1x128xf32, #tpu.memory_space<vmem>>, vector<1x1x128xf32>
    %48 = vector.shape_cast %47 : vector<1x1x128xf32> to vector<1x128xf32>
    %cst_27 = arith.constant dense<0.000000e+00> : vector<8x384xf32>
    %49 = tpu.matmul %42, %44, %cst_27 {dimension_numbers = #tpu.dot_dimension_numbers<[1], [0], [0], [1], [0, 0, 1, 1], [], []>} : vector<8x16xf32>, vector<16x384xf32>, vector<8x384xf32> -> vector<8x384xf32>
    %50 = arith.mulf %49, %46 : vector<8x384xf32>
    %51 = vector.extract_strided_slice %50 {offsets = [0, 0], sizes = [8, 128], strides = [1, 1]} : vector<8x384xf32> to vector<8x128xf32>
    %52 = vector.extract_strided_slice %50 {offsets = [0, 128], sizes = [8, 128], strides = [1, 1]} : vector<8x384xf32> to vector<8x128xf32>
    %53 = arith.addf %51, %52 : vector<8x128xf32>
    %54 = vector.extract_strided_slice %50 {offsets = [0, 256], sizes = [8, 128], strides = [1, 1]} : vector<8x384xf32> to vector<8x128xf32>
    %55 = arith.addf %53, %54 : vector<8x128xf32>
    %cst_28 = arith.constant dense<0.000000e+00> : vector<2x128xf32>
    %56 = tpu.matmul %20, %55, %cst_28 {dimension_numbers = #tpu.dot_dimension_numbers<[1], [0], [0], [1], [0, 0, 1, 1], [], []>} : vector<2x8xf32>, vector<8x128xf32>, vector<2x128xf32> -> vector<2x128xf32>
    %57 = vector.broadcast %48 : vector<1x128xf32> to vector<2x128xf32>
    %58 = arith.addf %56, %57 : vector<2x128xf32>
    %cst_29 = arith.constant 0.000000e+00 : f32
    %59 = vector.broadcast %cst_29 : f32 to vector<2x128xf32>
    %60 = arith.maximumf %58, %59 : vector<2x128xf32>
    %c2 = arith.constant 2 : index
    %c0_30 = arith.constant 0 : index
    %c0_31 = arith.constant 0 : index
    %61 = vector.load %arg1[%c2, %c0_30, %c0_31] : memref<4x8x16xf32, #tpu.memory_space<vmem>>, vector<1x8x16xf32>
    %62 = vector.shape_cast %61 : vector<1x8x16xf32> to vector<8x16xf32>
    %c2_32 = arith.constant 2 : index
    %c0_33 = arith.constant 0 : index
    %c0_34 = arith.constant 0 : index
    %63 = vector.load %arg2[%c2_32, %c0_33, %c0_34] : memref<4x16x384xf32, #tpu.memory_space<vmem>>, vector<1x16x384xf32>
    %64 = vector.shape_cast %63 : vector<1x16x384xf32> to vector<16x384xf32>
    %c2_35 = arith.constant 2 : index
    %c0_36 = arith.constant 0 : index
    %c0_37 = arith.constant 0 : index
    %65 = vector.load %arg3[%c2_35, %c0_36, %c0_37] : memref<4x8x384xf32, #tpu.memory_space<vmem>>, vector<1x8x384xf32>
    %66 = vector.shape_cast %65 : vector<1x8x384xf32> to vector<8x384xf32>
    %c2_38 = arith.constant 2 : index
    %c0_39 = arith.constant 0 : index
    %c0_40 = arith.constant 0 : index
    %67 = vector.load %arg4[%c2_38, %c0_39, %c0_40] : memref<4x1x128xf32, #tpu.memory_space<vmem>>, vector<1x1x128xf32>
    %68 = vector.shape_cast %67 : vector<1x1x128xf32> to vector<1x128xf32>
    %cst_41 = arith.constant dense<0.000000e+00> : vector<8x384xf32>
    %69 = tpu.matmul %62, %64, %cst_41 {dimension_numbers = #tpu.dot_dimension_numbers<[1], [0], [0], [1], [0, 0, 1, 1], [], []>} : vector<8x16xf32>, vector<16x384xf32>, vector<8x384xf32> -> vector<8x384xf32>
    %70 = arith.mulf %69, %66 : vector<8x384xf32>
    %71 = vector.extract_strided_slice %70 {offsets = [0, 0], sizes = [8, 128], strides = [1, 1]} : vector<8x384xf32> to vector<8x128xf32>
    %72 = vector.extract_strided_slice %70 {offsets = [0, 128], sizes = [8, 128], strides = [1, 1]} : vector<8x384xf32> to vector<8x128xf32>
    %73 = arith.addf %71, %72 : vector<8x128xf32>
    %74 = vector.extract_strided_slice %70 {offsets = [0, 256], sizes = [8, 128], strides = [1, 1]} : vector<8x384xf32> to vector<8x128xf32>
    %75 = arith.addf %73, %74 : vector<8x128xf32>
    %cst_42 = arith.constant dense<0.000000e+00> : vector<2x128xf32>
    %76 = tpu.matmul %20, %75, %cst_42 {dimension_numbers = #tpu.dot_dimension_numbers<[1], [0], [0], [1], [0, 0, 1, 1], [], []>} : vector<2x8xf32>, vector<8x128xf32>, vector<2x128xf32> -> vector<2x128xf32>
    %77 = vector.broadcast %68 : vector<1x128xf32> to vector<2x128xf32>
    %78 = arith.addf %76, %77 : vector<2x128xf32>
    %cst_43 = arith.constant 0.000000e+00 : f32
    %79 = vector.broadcast %cst_43 : f32 to vector<2x128xf32>
    %80 = arith.maximumf %78, %79 : vector<2x128xf32>
    %c3 = arith.constant 3 : index
    %c0_44 = arith.constant 0 : index
    %c0_45 = arith.constant 0 : index
    %81 = vector.load %arg1[%c3, %c0_44, %c0_45] : memref<4x8x16xf32, #tpu.memory_space<vmem>>, vector<1x8x16xf32>
    %82 = vector.shape_cast %81 : vector<1x8x16xf32> to vector<8x16xf32>
    %c3_46 = arith.constant 3 : index
    %c0_47 = arith.constant 0 : index
    %c0_48 = arith.constant 0 : index
    %83 = vector.load %arg2[%c3_46, %c0_47, %c0_48] : memref<4x16x384xf32, #tpu.memory_space<vmem>>, vector<1x16x384xf32>
    %84 = vector.shape_cast %83 : vector<1x16x384xf32> to vector<16x384xf32>
    %c3_49 = arith.constant 3 : index
    %c0_50 = arith.constant 0 : index
    %c0_51 = arith.constant 0 : index
    %85 = vector.load %arg3[%c3_49, %c0_50, %c0_51] : memref<4x8x384xf32, #tpu.memory_space<vmem>>, vector<1x8x384xf32>
    %86 = vector.shape_cast %85 : vector<1x8x384xf32> to vector<8x384xf32>
    %c3_52 = arith.constant 3 : index
    %c0_53 = arith.constant 0 : index
    %c0_54 = arith.constant 0 : index
    %87 = vector.load %arg4[%c3_52, %c0_53, %c0_54] : memref<4x1x128xf32, #tpu.memory_space<vmem>>, vector<1x1x128xf32>
    %88 = vector.shape_cast %87 : vector<1x1x128xf32> to vector<1x128xf32>
    %cst_55 = arith.constant dense<0.000000e+00> : vector<8x384xf32>
    %89 = tpu.matmul %82, %84, %cst_55 {dimension_numbers = #tpu.dot_dimension_numbers<[1], [0], [0], [1], [0, 0, 1, 1], [], []>} : vector<8x16xf32>, vector<16x384xf32>, vector<8x384xf32> -> vector<8x384xf32>
    %90 = arith.mulf %89, %86 : vector<8x384xf32>
    %91 = vector.extract_strided_slice %90 {offsets = [0, 0], sizes = [8, 128], strides = [1, 1]} : vector<8x384xf32> to vector<8x128xf32>
    %92 = vector.extract_strided_slice %90 {offsets = [0, 128], sizes = [8, 128], strides = [1, 1]} : vector<8x384xf32> to vector<8x128xf32>
    %93 = arith.addf %91, %92 : vector<8x128xf32>
    %94 = vector.extract_strided_slice %90 {offsets = [0, 256], sizes = [8, 128], strides = [1, 1]} : vector<8x384xf32> to vector<8x128xf32>
    %95 = arith.addf %93, %94 : vector<8x128xf32>
    %cst_56 = arith.constant dense<0.000000e+00> : vector<2x128xf32>
    %96 = tpu.matmul %20, %95, %cst_56 {dimension_numbers = #tpu.dot_dimension_numbers<[1], [0], [0], [1], [0, 0, 1, 1], [], []>} : vector<2x8xf32>, vector<8x128xf32>, vector<2x128xf32> -> vector<2x128xf32>
    %97 = vector.broadcast %88 : vector<1x128xf32> to vector<2x128xf32>
    %98 = arith.addf %96, %97 : vector<2x128xf32>
    %cst_57 = arith.constant 0.000000e+00 : f32
    %99 = vector.broadcast %cst_57 : f32 to vector<2x128xf32>
    %100 = arith.maximumf %98, %99 : vector<2x128xf32>
    %101 = tpu.concatenate %40, %60, %80, %100 in 0 : vector<2x128xf32>, vector<2x128xf32>, vector<2x128xf32>, vector<2x128xf32> -> vector<8x128xf32>
    %c0_58 = arith.constant 0 : index
    %c0_59 = arith.constant 0 : index
    %c0_60 = arith.constant 0 : index
    %102 = vector.load %arg5[%c0_58, %c0_59, %c0_60] : memref<1x8x128xf32, #tpu.memory_space<vmem>>, vector<1x8x128xf32>
    %103 = vector.shape_cast %102 : vector<1x8x128xf32> to vector<8x128xf32>
    %104 = vector.shape_cast %101 : vector<8x128xf32> to vector<1x8x128xf32>
    tpu.vector_store %arg5[%c0_58, %c0_59, %c0_60], %104 {strides = array<i32>} : memref<1x8x128xf32, #tpu.memory_space<vmem>>, vector<1x8x128xf32>,
    return
  }
  func.func @transform_0(%arg0: i32) -> (i32, i32, i32) {
    %c0_i32 = arith.constant 0 : i32
    %c0_i32_0 = arith.constant 0 : i32
    %c0_i32_1 = arith.constant 0 : i32
    return %arg0, %c0_i32, %c0_i32_0 : i32, i32, i32
  }
  func.func @transform_1(%arg0: i32) -> (i32, i32, i32) {
    %c0_i32 = arith.constant 0 : i32
    %c0_i32_0 = arith.constant 0 : i32
    %c0_i32_1 = arith.constant 0 : i32
    return %arg0, %c0_i32, %c0_i32_0 : i32, i32, i32
  }
  func.func @transform_2(%arg0: i32) -> (i32, i32, i32) {
    %c0_i32 = arith.constant 0 : i32
    %c0_i32_0 = arith.constant 0 : i32
    %c0_i32_1 = arith.constant 0 : i32
    return %arg0, %c0_i32, %c0_i32_0 : i32, i32, i32
  }
  func.func @transform_3(%arg0: i32) -> (i32, i32, i32) {
    %c0_i32 = arith.constant 0 : i32
    %c0_i32_0 = arith.constant 0 : i32
    %c0_i32_1 = arith.constant 0 : i32
    return %arg0, %c0_i32, %c0_i32_0 : i32, i32, i32
  }
  func.func @transform_4(%arg0: i32) -> (i32, i32, i32) {
    %c0_i32 = arith.constant 0 : i32
    %c0_i32_0 = arith.constant 0 : i32
    %c0_i32_1 = arith.constant 0 : i32
    return %arg0, %c0_i32, %c0_i32_0 : i32, i32, i32
  }
}

</mosaic_0001>

<bundles_post_ra>
// kernel: tpu_custom_call.1
= control target key start
LH: loop header
LB: loop body
LE: loop exit
PB: predicated region body
PF: predicated region fallthrough
CT: control target
= control target key end

     0   :  { %s2238_s0 = inlined_call_operand.hbm [shape: f32[8,8,16], index: 0, kind: input, shape index: {}]   ;;  %s2239_s1 = inlined_call_operand.hbm [shape: f32[8,16,384], index: 1, kind: input, shape index: {}]   ;;  %s2240_s2 = inlined_call_operand.hbm [shape: f32[8,8,384], index: 2, kind: input, shape index: {}]   ;;  %s2241_s3 = inlined_call_operand.vmem [shape: f32[8,1,128], index: 3, kind: input, shape index: {}]   ;;  %s2242_s4 = inlined_call_operand.hbm [shape: f32[2,8,128], index: 4, kind: output, shape index: {}]  }
   0x1   :  { %2247 = sst [smem:[#allocation12_spill]] %s2238_s0 }
   0x2   :  { %2248 = sst [smem:[#allocation13_spill]] %s2239_s1 }
   0x3   :  { %9 = vsyncpa [#allocation3], 0 }
   0x4   :  { %11 = vsyncpa [#allocation3 + $0x1], 0 }
   0x5   :  { %12 = vsyncpa [#allocation6], 0 }
   0x6   :  { %14 = vsyncpa [#allocation6 + $0x1], 0 }
   0x7   :  { %15 = vsyncpa [#allocation4], 0 }
   0x8   :  { %17 = vsyncpa [#allocation4 + $0x1], 0  ;;  %s1887_s15 = smov 0   ;;  %s1889_s16 = smov 0  }
   0x9   :  { %s1891_s17 = smov 0   ;;  %s1893_s18 = smov 0  }
   0xa LB: > { %s1908_s19 = sadd.s32 4294967295, %s1849_s18   ;;  %s1453_s20 = sadd.s32 4294967294, %s1849_s18   ;;  %s1849_s18 = sphi %s1893_s18, %s2268_s18   ;;  %s1845_s17 = sphi %s1891_s17, %s2267_s17   ;;  %s1841_s16 = sphi %s1889_s16, %s2266_s16   ;;  %s1837_s15 = sphi %s1887_s15, %s2265_s15  }
   0xb   : > { %s1912_s21 = sadd.s32 1, %s1849_s18   ;;  %s30_s22 = sadd.s32 1, %s1845_s17 }
   0xc   : > { %s27_s23 = ssub.s32 %s1849_s18, %s1912_s21  ;;  %p37_p0 = scmp.ne.s32.totalorder %s1845_s17, %s1841_s16 }
   0xd   : > { %p28_p1 = scmp.eq.s32.totalorder %s27_s23, 0  ;;  %p38_p2 = scmp.eq.s32.totalorder %s1849_s18, 0 }
   0xe   : > { %p43_p3 = scmp.ne.s32.totalorder %s1841_s16, %s1837_s15  ;;  %p44_p4 = scmp.eq.s32.totalorder %s1908_s19, 0 }
   0xf   : > { %s1924_s24 = scalar_select %p28_p1, %s1845_s17, %s30_s22  }
  0x10   : > { %p39_p5 = por %p38_p2, %p37_p0  ;;  %p1926_p6 = por %p44_p4, %p43_p3 }
  0x11   : > { %p145_p7 = scmp.eq.s32.totalorder %s1908_s19, 1  ;;  %p151_p8 = scmp.eq.s32.totalorder %s1453_s20, 1 }
  0x12   : > { %s2249_s25 = scalar_select %p1926_p6, 1, 0 }
  0x13   : > { %p1648_p10 = scmp.lt.s32.totalorder %s1849_s18, 2  ;;  %p1933_p11 = por %p145_p7, %p37_p0 }
  0x14   : > { %p1937_p12 = por %p151_p8, %p43_p3  ;;  %s1942_s28 = sand.u32 1, %s1845_s17  }
  0x15   : > { %s2250_s26 = scalar_select %p1933_p11, 1, 0 }
  0x16   : > { %s2251_s27 = scalar_select %p1937_p12, 1, 0 }
  0x17   : > { %p1944_p13 = pnand %p1648_p10, %p39_p5  ;;  %s192_s30 = sand.u32 1, %s1849_s18  }
  0x18   : > { %s1620_s5 = smul.u32 192, %s1942_s28  ;;  %s2253_s1 = sld [smem:[#allocation13_spill]] }
  0x19   : > { %s1621_s6 = smul.u32 3072, %s1849_s18  ;;  %s1959_s12 = scalar_lea.sflag [#allocation6], %s192_s30 }
  0x1a   : > { %s196_s7 = scalar_lea.vmem [#allocation5], %s1620_s5  ;;  %p1965_p2 = pneg %p1944_p13 }
  0x1b   : > { %s204_s8 = sshll.u32 %s196_s7, 4  ;;  %s1956_s8 = int_to_ptr.vmem [resolvable:$true] %s204_s8 }
  0x1e   : > { %s1954_s11 = scalar_lea.hbm %s2253_s1, %s1621_s6  ;;  %s1694_s23 = scalar_lea.hbm %s2253_s1, 6144 }
  0x1f   : > { %s1689_s13 = scalar_lea.hbm %s1954_s11, 3072  ;;  %p1695_p5 = scmp.lt.u32.totalorder %s1954_s11, %s2253_s1 }
  0x20   : > { %p1690_p1 = scmp.ne.s32.totalorder %s1954_s11, %s1689_s13  ;;  %p1696_p7 = scmp.lt.u32.totalorder %s1694_s23, %s1689_s13 }
  0x21   : > { %p1698_p10 = scmp.lt.u32.totalorder %s1689_s13, %s1954_s11 }
  0x22   : > { %p1692_p3 = pnand %p1965_p2, %p1690_p1  ;;  %p1697_p8 = por %p1696_p7, %p1695_p5 }
  0x24   : > { %p1693_p4 = pneg %p1692_p3  ;;  %p1699_p9 = por %p1698_p10, %p1697_p8 }
  0x26   : > { %p1700_p0 = pnand %p1699_p9, %p1693_p4 }
  0x28   : > { %1703 = shalt.err (!%p1700_p0)
}
  0x29   : > { %s1704_s30 = scalar_lea.vmem %s1956_s8, 3072  ;;  %s1851_s7 = smov [#allocation5]  }
  0x2a   : > { %p1705_p1 = scmp.ne.s32.totalorder %s1956_s8, %s1704_s30  ;;  %s1709_s9 = sshll.u32 %s1851_s7, 4  ;;  %s1710_s9 = int_to_ptr.vmem [resolvable:$false] %s1709_s9 }
  0x2b   : > { %s1711_s10 = scalar_lea.vmem %s1710_s9, 6144  ;;  %p1712_p11 = scmp.lt.s32.totalorder %s1956_s8, %s1710_s9 }
  0x2c   : > { %p1707_p3 = pnand %p1705_p1, %p1965_p2  ;;  %p1713_p6 = scmp.lt.s32.totalorder %s1711_s10, %s1704_s30 }
  0x2e   : > { %p1708_p12 = pneg %p1707_p3  ;;  %p1714_p5 = por %p1713_p6, %p1712_p11 }
  0x30   : > { %p1715_p7 = pnand %p1714_p5, %p1708_p12 }
  0x32   : > { %1718 = shalt.err (!%p1715_p7)
}
  0x33   : > { %s2245_s13 = smov 384   ;;  %s2246_s20 = smov 24  }
  0x34   : > { %1640 = dma.hbm_to_vmem [thread:$0]  (!%p1944_p13), %s1954_s11, 3072, %s1956_s8, %s1959_s12, %s2245_s13, %s2245_s13, %s2246_s20  }
  0x35   : > { %p242_p6 = scmp.lt.s32.totalorder %s1849_s18, 3  ;;  %s1456_s22 = sshll.u32 %s1942_s28, 5 }
  0x36   : > { %s1523_s23 = sshll.u32 %s1849_s18, 9  ;;  %p2255_p9 = scmp.ge.s32.totalorder %s1849_s18, 1 }
  0x37   : > { %s2257_s0 = sld [smem:[#allocation12_spill]]  ;;  %s175_s9 = scalar_lea.vmem [#allocation2], %s1456_s22 }
  0x38   : > { %p1997_p11 = pnand %p2255_p9, %p242_p6  ;;  %s182_s10 = sshll.u32 %s175_s9, 4  ;;  %s2006_s10 = int_to_ptr.vmem [resolvable:$true] %s182_s10 }
  0x39   : > { %s1622_s8 = smul.u32 96, %s1942_s28  ;;  %s172_s11 = scalar_lea.sflag [#allocation3], %s1942_s28 }
  0x3a   : > { %s2256_s5 = scalar_select %p1997_p11, 1, 0 }
  0x3d   : > { %s2004_s7 = scalar_lea.hbm %s2257_s0, %s1523_s23  ;;  %s1724_s23 = scalar_lea.hbm %s2257_s0, 1024 }
  0x3e   : > { %s1719_s13 = scalar_lea.hbm %s2004_s7, 512  ;;  %p1725_p8 = scmp.lt.u32.totalorder %s2004_s7, %s2257_s0 }
  0x3f   : > { %p1720_p12 = scmp.ne.s32.totalorder %s2004_s7, %s1719_s13  ;;  %p1726_p10 = scmp.lt.u32.totalorder %s1724_s23, %s1719_s13 }
  0x40   : > { %p1728_p3 = scmp.lt.u32.totalorder %s1719_s13, %s2004_s7 }
  0x41   : > { %p1722_p0 = pnand %p1720_p12, %p1965_p2  ;;  %p1727_p1 = por %p1726_p10, %p1725_p8 }
  0x43   : > { %p1723_p4 = pneg %p1722_p0  ;;  %p1729_p5 = por %p1728_p3, %p1727_p1 }
  0x45   : > { %p1730_p7 = pnand %p1729_p5, %p1723_p4 }
  0x47   : > { %1733 = shalt.err (!%p1730_p7)
}
  0x48   : > { %s1734_s22 = scalar_lea.vmem %s2006_s10, 512  ;;  %s1854_s1 = smov [#allocation2]  }
  0x49   : > { %p1735_p6 = scmp.ne.s32.totalorder %s2006_s10, %s1734_s22  ;;  %s1739_s20 = sshll.u32 %s1854_s1, 4  ;;  %s1740_s20 = int_to_ptr.vmem [resolvable:$false] %s1739_s20 }
  0x4a   : > { %s1741_s9 = scalar_lea.vmem %s1740_s20, 1024  ;;  %p1742_p0 = scmp.lt.s32.totalorder %s2006_s10, %s1740_s20 }
  0x4b   : > { %p1737_p9 = pnand %p1735_p6, %p1965_p2  ;;  %p1743_p11 = scmp.lt.s32.totalorder %s1741_s9, %s1734_s22 }
  0x4d   : > { %p1738_p12 = pneg %p1737_p9  ;;  %p1744_p8 = por %p1743_p11, %p1742_p0 }
  0x4f   : > { %p1745_p10 = pnand %p1744_p8, %p1738_p12 }
  0x51   : > { %1748 = shalt.err (!%p1745_p10)
}
  0x52   : > { %s1855_s13 = smov 128   ;;  %s1856_s23 = smov 8  }
  0x53   : > { %1637 = dma.hbm_to_vmem [thread:$0]  (!%p1944_p13), %s2004_s7, 512, %s2006_s10, %s172_s11, %s1855_s13, %s1855_s13, %s1856_s23  }
  0x54   : > { %s1623_s6 = smul.u32 1536, %s1849_s18  ;;  %s218_s30 = scalar_lea.vmem [#allocation7], %s1622_s8 }
  0x55   : > { %s226_s1 = sshll.u32 %s218_s30, 4  ;;  %s1754_s10 = scalar_lea.hbm %s2240_s2, 3072  ;;  %s2041_s1 = int_to_ptr.vmem [resolvable:$true] %s226_s1 }
  0x56   : > { %s2039_s9 = scalar_lea.hbm %s2240_s2, %s1623_s6 }
  0x57   : > { %s1749_s0 = scalar_lea.hbm %s2039_s9, 1536  ;;  %p1755_p3 = scmp.lt.u32.totalorder %s2039_s9, %s2240_s2 }
  0x58   : > { %p1750_p11 = scmp.ne.s32.totalorder %s2039_s9, %s1749_s0  ;;  %p1756_p5 = scmp.lt.u32.totalorder %s1754_s10, %s1749_s0 }
  0x59   : > { %p1758_p6 = scmp.lt.u32.totalorder %s1749_s0, %s2039_s9 }
  0x5a   : > { %p1752_p4 = pnand %p1750_p11, %p1965_p2  ;;  %p1757_p7 = por %p1756_p5, %p1755_p3 }
  0x5c   : > { %p1753_p1 = pneg %p1752_p4  ;;  %p1759_p9 = por %p1758_p6, %p1757_p7 }
  0x5e   : > { %p1760_p12 = pnand %p1759_p9, %p1753_p1 }
  0x60   : > { %1763 = shalt.err (!%p1760_p12)
}
  0x61   : > { %s1764_s13 = scalar_lea.vmem %s2041_s1, 1536  ;;  %s1857_s23 = smov [#allocation7]  }
  0x62   : > { %p1765_p0 = scmp.ne.s32.totalorder %s2041_s1, %s1764_s13  ;;  %s1769_s6 = sshll.u32 %s1857_s23, 4  ;;  %s1770_s6 = int_to_ptr.vmem [resolvable:$false] %s1769_s6 }
  0x63   : > { %s1771_s30 = scalar_lea.vmem %s1770_s6, 3072  ;;  %p1772_p11 = scmp.lt.s32.totalorder %s2041_s1, %s1770_s6 }
  0x64   : > { %p1767_p8 = pnand %p1765_p0, %p1965_p2  ;;  %p1773_p4 = scmp.lt.s32.totalorder %s1771_s30, %s1764_s13 }
  0x66   : > { %p1768_p10 = pneg %p1767_p8  ;;  %p1774_p3 = por %p1773_p4, %p1772_p11 }
  0x68   : > { %p1775_p5 = pnand %p1774_p3, %p1768_p10 }
  0x6a   : > { %1778 = shalt.err (!%p1775_p5)
}
  0x6b   : > { %s2258_s0 = smov 24   ;;  %s2259_s22 = smov 384  }
  0x6c   : > { %1643 = dma.hbm_to_vmem [thread:$0]  (!%p1944_p13), %s2039_s9, 1536, %s2041_s1, %s1959_s12, %s2259_s22, %s2259_s22, %s2258_s0  }
  0x6d   : > { %p2260_p2 = scmp.ne.s32.totalorder %s2256_s5, 0 }
  0x6e   : > { %s2071_s14 = sand.u32 (!%p2260_p2), 1, %s1841_s16   ;;  %p2261_p1 = scmp.ne.s32.totalorder (!%p2260_p2), %s2249_s25, 0 }
  0x6f   : > { %246 = sbr.rel (%p2260_p2) target bundleno = 1246 (0x4de), region = 36  ;;  %s1466_s20 = sshll.u32 (!%p2260_p2), %s2071_s14, 5 }
  0x70   : > { %s249_s7 = scalar_lea.sflag (!%p2260_p2), [#allocation3], %s2071_s14  ;;  %s2075_s28 = scalar_lea.vmem (!%p2260_p2), [#allocation2], %s1466_s20 }
  0x76   : > { %1824 = dma.done.wait (%p2261_p1), %s249_s7, 512  }
  0x77   : > { %1826 = vsyncadd (%p2261_p1), %s249_s7, 4294966784  ;;  %s257_s29 = sand.u32 1, %s1908_s19   ;;  %s1624_s12 = smul.u32 192, %s2071_s14 }
  0x78   : > { %s258_s5 = scalar_lea.sflag [#allocation6], %s257_s29 }
  0x79   : > { %s2083_s1 = scalar_lea.vmem [#allocation5], %s1624_s12 }
  0x7a   : > { %1828 = dma.done.wait (%p2261_p1), %s258_s5, 4608  }
  0x7b   : > { %1830 = vsyncadd (%p2261_p1), %s258_s5, 4294962688  ;;  %v1858_v0 = vmov 0.0|0.0   ;;  %v1859_v1 = vmov 0.0   ;;  %vm1860_vm0 = vmmov 0   ;;  %v338_v2 = vld [vmem:[%s2083_s1 + $0x8] sm:$0xff]  ;;  %v341_v3 = vld [vmem:[%s2083_s1 + $0x20] sm:$0xff]  ;;  %v317_v19 = vlaneseq }
  0x7c   : > { %1596 = vmatprep.subr.bf16.mxu1 %v1858_v0  ;;  %415 = vmatprep.mubr.f32.mxu0 %v1859_v1  ;;  %v337_v4 = vld [vmem:[%s2083_s1] sm:$0xff]  ;;  %v1592_v5 = vpack.c.bf16 %v341_v3, %v338_v2  ;;  %v340_v6 = vld [vmem:[%s2083_s1 + $0x18] sm:$0xff]  ;;  %v339_v7 = vld [vmem:[%s2083_s1 + $0x10] sm:$0xff]  ;;  %vm347_vm1 = vcmask 130048   ;;  %s1625_s25 = smul.u32 96, %s2071_s14  ;;  %vm503_vm3 = vcmask 64512  }
  0x7d   : > { %1548 = vmatprep.mubr.msk.f32.mxu1 %vm1860_vm0, %v1859_v1  ;;  %v342_v8 = vld [vmem:[%s2083_s1 + $0x28] sm:$0xff]  ;;  %v1594_v9 = vpack.c.bf16 %v340_v6, %v337_v4  ;;  %v336_v11 = vld [vmem:[%s2075_s28] sm:$0xff]  ;;  %v1476_v12 = vld [vmem:[%s2083_s1 + $0x38] sm:$0xff]  ;;  %v320_v20 = vand.u32 127, %v317_v19  ;;  %v318_v24 = vshrl.u32 %v317_v19, 7  ;;  %s1468_s10 = sshll.u32 %s1908_s19, 2 }
  0x7e   : > { %v1597_v10 = vpack.c.bf16 %v342_v8, %v339_v7  ;;  %1593 = vmatprep.subr.bf16.mxu0 %v1592_v5  ;;  %v1479_v13 = vld [vmem:[%s2083_s1 + $0x50] sm:$0xff]  ;;  %v1478_v16 = vld [vmem:[%s2083_s1 + $0x48] sm:$0xff]  ;;  %s2116_s9 = scalar_lea.vmem [#allocation7], %s1625_s25  ;;  %v1477_v33 = vld [vmem:[%s2083_s1 + $0x40] sm:$0xff]  ;;  %p313_p13 = scmp.lt.s32.totalorder %s1468_s10, 7  ;;  %vm1310_vm4 = vcmask 1041408  }
  0x7f   : > { %1595 = vmatpush1.bf16.msra.mxu0 %v1594_v9  ;;  %v1599_v14 = vpack.c.bf16 %v1479_v13, %v1476_v12  ;;  %v1475_v15 = vld [vmem:[%s2083_s1 + $0x30] sm:$0xff]  ;;  %v1474_v18 = vld [vmem:[%s2075_s28 + $0x8] sm:$0xff]  ;;  %v343_v21 = vld [vmem:[%s2116_s9] sm:$0xff]  ;;  %v325_v25 = vand.u32 1, %v320_v20  ;;  %vm1312_vm5 = vcmask 1043456   ;;  %s1467_s23 = sshll.u32 %s2071_s14, 3 }
  0x80   : > { %1598 = vmatpush3.bf16.msra.mxu1 %v1597_v10  ;;  %1551 = vmatprep.subr.mxu0 %v1859_v1  ;;  %v1601_v17 = vpack.c.bf16 %v1478_v16, %v1475_v15  ;;  %v344_v22 = vld [vmem:[%s2116_s9 + $0x8] sm:$0xff]  ;;  %v345_v23 = vld [vmem:[%s2116_s9 + $0x10] sm:$0xff]  ;;  %v1480_v34 = vld [vmem:[%s2083_s1 + $0x58] sm:$0xff]  ;;  %s2270_s10 = smov (!%p313_p13, %s1468_s10), 7  ;;  %s1520_s6 = sshll.u32 %s1908_s19, 7  ;;  %vm1314_vm6 = vcmask 1045504  }
  0x81   : > { %1600 = vmatprep.subr.bf16.mxu1 %v1599_v14  ;;  %vm333_vm2 = vcmp.eq.s32.totalorder %v318_v24, %v325_v25  ;;  %v1604_v38 = vpack.c.bf16 %v1480_v34, %v1477_v33  ;;  %v1481_v40 = vld [vmem:[%s2116_s9 + $0x18] sm:$0xff]  ;;  %v1482_v41 = vld [vmem:[%s2116_s9 + $0x20] sm:$0xff]  ;;  %v1491_v45 = vld [vmem:[%s2083_s1 + $0x68] sm:$0xff]  ;;  %s2169_s13 = scalar_lea.vmem %s2241_s3, %s2270_s10  ;;  %s308_s30 = scalar_lea.vmem [#allocation8], %s1467_s23 }
  0x82   : > { %1470 = vmatmul.mubr.msk.f32.vlgmr.msra.gmra.mrb[0].mxu0 %vm347_vm1, %v336_v11  ;;  %v2124_v37 = vsel %vm333_vm2, 1.0, %v1859_v1  ;;  %v1494_v46 = vld [vmem:[%s2083_s1 + $0x80] sm:$0xff]  ;;  %v1493_v50 = vld [vmem:[%s2083_s1 + $0x78] sm:$0xff]  ;;  %v1489_v52 = vld [vmem:[%s2075_s28 + $0x10] sm:$0xff]  ;;  %s1331_s0 = sshll.u32 %s308_s30, 4  ;;  %s2194_s7 = scalar_lea.hbm %s2242_s4, %s1520_s6  ;;  %s2196_s0 = int_to_ptr.vmem [resolvable:$true] %s1331_s0 }
  0x83   : > { %1549 = vmatmul.mubr.msk.f32.vlgmr.msra.gmra.mrb[0].mxu1 %vm347_vm1, %v336_v11  ;;  %1553 = vmatprep.mubr.msk.f32.mxu0 %vm1860_vm0, %v1859_v1  ;;  %v1606_v48 = vpack.c.bf16 %v1494_v46, %v1491_v45  ;;  %v1490_v49 = vld [vmem:[%s2083_s1 + $0x60] sm:$0xff]  ;;  %v1483_v55 = vld [vmem:[%s2116_s9 + $0x28] sm:$0xff]  ;;  %v1492_v57 = vld [vmem:[%s2083_s1 + $0x70] sm:$0xff]  ;;  %s1779_s29 = scalar_lea.vmem %s2196_s0, 128  ;;  %p2262_p6 = scmp.ne.s32.totalorder %s2250_s26, 0 }
  0x84   : > { %660 = vmatprep.mubr.f32.mxu1 %v1859_v1  ;;  %1602 = vmatpush1.bf16.msra.mxu1 %v1601_v17  ;;  %v1608_v51 = vpack.c.bf16 %v1493_v50, %v1490_v49  ;;  %v1495_v58 = vld [vmem:[%s2083_s1 + $0x88] sm:$0xff]  ;;  %v1496_v2 = vld [vmem:[%s2116_s9 + $0x30] sm:$0xff]  ;;  %v1497_v3 = vld [vmem:[%s2116_s9 + $0x38] sm:$0xff]  ;;  %p1780_p7 = scmp.ne.s32.totalorder %s2196_s0, %s1779_s29  ;;  %s1861_s19 = smov [#allocation8]  }
  0x85   : > { %1563 = vmatprep.subr.mxu1 %v1859_v1  ;;  %v1611_v62 = vpack.c.bf16 %v1495_v58, %v1492_v57  ;;  %v1506_v7 = vld [vmem:[%s2083_s1 + $0x98] sm:$0xff]  ;;  %v1509_v8 = vld [vmem:[%s2083_s1 + $0xb0] sm:$0xff]  ;;  %v1508_v12 = vld [vmem:[%s2083_s1 + $0xa8] sm:$0xff]  ;;  %s1783_s12 = sshll.u32 %s1861_s19, 4  ;;  %s1784_s12 = int_to_ptr.vmem [resolvable:$false] %s1783_s12 }
  0x86   : > { %v1613_v10 = vpack.c.bf16 %v1509_v8, %v1506_v7  ;;  %v1505_v11 = vld [vmem:[%s2083_s1 + $0x90] sm:$0xff]  ;;  %v1504_v14 = vld [vmem:[%s2075_s28 + $0x18] sm:$0xff]  ;;  %v1472_v15 = vld [vmem:[%s2169_s13] ss:$0 sm:$0xff]  ;;  %s1318_s28 = scalar_lea.sflag [#allocation4], %s2071_s14  ;;  %p1781_p9 = pnand %p1780_p7, %p2262_p6 }
  0x87   : > { %1485 = vmatmul.mubr.msk.f32.vlgmr.msra.gmra.mrb[2].mxu1 %vm347_vm1, %v1474_v18  ;;  %v1615_v13 = vpack.c.bf16 %v1508_v12, %v1505_v11  ;;  %v1487_v16 = vld [vmem:[%s2169_s13 + $0x1] ss:$0 sm:$0xff]  ;;  %v1510_v25 = vld [vmem:[%s2083_s1 + $0xb8] sm:$0xff]  ;;  %v1511_v34 = vld [vmem:[%s2116_s9 + $0x48] sm:$0xff]  ;;  %s1785_s5 = scalar_lea.vmem %s1784_s12, 256  ;;  %p1786_p0 = scmp.lt.s32.totalorder %s2196_s0, %s1784_s12 }
  0x88   : > { %1565 = vmatprep.mubr.msk.f32.mxu1 %vm1860_vm0, %v1859_v1  ;;  %v1507_v24 = vld [vmem:[%s2083_s1 + $0xa0] sm:$0xff]  ;;  %p1782_p12 = pneg %p1781_p9  ;;  %p1787_p8 = scmp.lt.s32.totalorder %s1785_s5, %s1779_s29 }
  0x8a   : > { %p1788_p10 = por %p1787_p8, %p1786_p0 }
  0x8c   : > { %p1789_p11 = pnand %p1788_p10, %p1782_p12 }
 0x155   : > { %v417_v26 = vpop.f32.mrb[0].mxu0 }
 0x156   : > { %v488_v27 = vpop.f32.mrb[0].mxu1  ;;  %v492_v28 = vmul.f32 %v417_v26, %v343_v21  ;;  %v419_v29 = vpop.f32.mrb[1].mxu0  ;;  %v1498_v21 = vld [vmem:[%s2116_s9 + $0x40] sm:$0xff] }
 0x157   : > { %v1550_v30 = vpop.f32.mrb[1].mxu1  ;;  %v493_v31 = vmul.f32 %v419_v29, %v344_v22  ;;  %v494_v32 = vmul.f32 %v488_v27, %v345_v23 }
 0x159   : > { %v495_v35 = vadd.f32 %v493_v31, %v492_v28 }
 0x15a   : > { %v662_v39 = vpop.f32.mrb[2].mxu1 }
 0x15b   : > { %v496_v36 = vadd.f32 %v495_v35, %v494_v32  ;;  %v664_v42 = vpop.f32.mrb[3].mxu1  ;;  %v737_v43 = vmul.f32 %v1481_v40, %v662_v39  ;;  %v1618_v32 = vpack.c.bf16 %v1510_v25, %v1507_v24  ;;  %v1512_v35 = vld [vmem:[%s2116_s9 + $0x50] sm:$0xff] }
 0x15c   : > { %v738_v44 = vmul.f32 %v1482_v41, %v664_v42  ;;  %v1502_v41 = vld [vmem:[%s2169_s13 + $0x2] ss:$0 sm:$0xff] }
 0x15d   : > { %1552 = vmatpush3.msra.mxu0 %v496_v36 }
 0x15e   : > { %1554 = vmatmul.mubr.msk.f32.vlgmr.msra.gmra.mrb[2].mxu0 %vm503_vm3, %v2124_v37  ;;  %1603 = vmatprep.subr.bf16.mxu0 %v1858_v0  ;;  %v740_v47 = vadd.f32 %v738_v44, %v737_v43 }
 0x15f   : > { %1605 = vmatpush3.bf16.msra.mxu0 %v1604_v38  ;;  %1560 = vmatprep.mubr.msk.f32.mxu0 %vm1860_vm0, %v1859_v1 }
 0x160   : > { %1607 = vmatprep.subr.bf16.mxu0 %v1606_v48 }
 0x162   : > { %1561 = vmatmul.mubr.msk.f32.vlgmr.msra.gmra.mrb[4].mxu0 %vm347_vm1, %v1474_v18 }
 0x163   : > { %901 = vmatprep.mubr.f32.mxu0 %v1859_v1  ;;  %1609 = vmatpush1.bf16.msra.mxu0 %v1608_v51  ;;  %v1517_v51 = vld [vmem:[%s2169_s13 + $0x3] ss:$0 sm:$0xff] }
 0x164   : > { %1575 = vmatprep.subr.mxu0 %v1859_v1 }
 0x166   : > { %1500 = vmatmul.mubr.msk.f32.vlgmr.msra.gmra.mrb[6].mxu0 %vm347_vm1, %v1489_v52 }
 0x167   : > { %1577 = vmatprep.mubr.msk.f32.mxu0 %vm1860_vm0, %v1859_v1 }
 0x231   : > { %v573_v53 = vpop.f32.mrb[2].mxu0 }
 0x232   : > { %v1555_v54 = vpop.f32.mrb[3].mxu0  ;;  %v574_v18 = vadd.f32 %v1472_v15, %v573_v53 }
 0x234   : > { %v577_v26 = vmax.f32 %v574_v18, 0.0 }
 0x235   : > { %v733_v56 = vpop.f32.mrb[4].mxu0 }
 0x236   : > { %v739_v59 = vmul.f32 %v1483_v55, %v733_v56  ;;  %v1562_v60 = vpop.f32.mrb[5].mxu0 }
 0x238   : > { %v741_v61 = vadd.f32 %v740_v47, %v739_v59 }
 0x239   : > { %v903_v63 = vpop.f32.mrb[6].mxu0 }
 0x23a   : > { %1564 = vmatpush3.msra.mxu1 %v741_v61  ;;  %v905_v4 = vpop.f32.mrb[7].mxu0  ;;  %v978_v5 = vmul.f32 %v1496_v2, %v903_v63 }
 0x23b   : > { %1566 = vmatmul.mubr.msk.f32.vlgmr.msra.gmra.mrb[4].mxu1 %vm503_vm3, %v2124_v37  ;;  %1610 = vmatprep.subr.bf16.mxu1 %v1858_v0  ;;  %v979_v6 = vmul.f32 %v1497_v3, %v905_v4 }
 0x23c   : > { %1612 = vmatpush3.bf16.msra.mxu1 %v1611_v62  ;;  %1572 = vmatprep.mubr.msk.f32.mxu1 %vm1860_vm0, %v1859_v1 }
 0x23d   : > { %v981_v9 = vadd.f32 %v979_v6, %v978_v5  ;;  %1614 = vmatprep.subr.bf16.mxu1 %v1613_v10 }
 0x23f   : > { %1573 = vmatmul.mubr.msk.f32.vlgmr.msra.gmra.mrb[6].mxu1 %vm347_vm1, %v1489_v52 }
 0x240   : > { %1142 = vmatprep.mubr.f32.mxu1 %v1859_v1  ;;  %1616 = vmatpush1.bf16.msra.mxu1 %v1615_v13 }
 0x241   : > { %1587 = vmatprep.subr.mxu1 %v1859_v1 }
 0x243   : > { %1515 = vmatmul.mubr.msk.f32.vlgmr.msra.gmra.mrb[8].mxu1 %vm347_vm1, %v1504_v14 }
 0x244   : > { %1589 = vmatprep.mubr.msk.f32.mxu1 %vm1860_vm0, %v1859_v1 }
 0x30e   : > { %v814_v17 = vpop.f32.mrb[4].mxu1 }
 0x30f   : > { %v815_v19 = vadd.f32 %v1487_v16, %v814_v17  ;;  %v1567_v20 = vpop.f32.mrb[5].mxu1 }
 0x311   : > { %v818_v22 = vmax.f32 %v815_v19, 0.0 }
 0x312   : > { %v974_v23 = vpop.f32.mrb[6].mxu1 }
 0x313   : > { %v1302_v27 = vrot.slane %v818_v22, 6  ;;  %v980_v28 = vmul.f32 %v1498_v21, %v974_v23  ;;  %v1574_v29 = vpop.f32.mrb[7].mxu1 }
 0x315   : > { %v1311_v30 = vsel %vm1310_vm4, %v577_v26, %v1302_v27  ;;  %v982_v31 = vadd.f32 %v981_v9, %v980_v28 }
 0x316   : > { %v1144_v33 = vpop.f32.mrb[8].mxu1 }
 0x317   : > { %1576 = vmatpush3.msra.mxu0 %v982_v31  ;;  %v1146_v36 = vpop.f32.mrb[9].mxu1  ;;  %v1219_v38 = vmul.f32 %v1511_v34, %v1144_v33 }
 0x318   : > { %1578 = vmatmul.mubr.msk.f32.vlgmr.msra.gmra.mrb[8].mxu0 %vm503_vm3, %v2124_v37  ;;  %1617 = vmatprep.subr.bf16.mxu0 %v1858_v0  ;;  %v1220_v39 = vmul.f32 %v1512_v35, %v1146_v36  ;;  %v1513_v0 = vld [vmem:[%s2116_s9 + $0x58] sm:$0xff] }
 0x319   : > { %1619 = vmatpush3.bf16.msra.mxu0 %v1618_v32  ;;  %1584 = vmatprep.mubr.msk.f32.mxu0 %vm1860_vm0, %v1859_v1 }
 0x31a   : > { %v1222_v40 = vadd.f32 %v1220_v39, %v1219_v38 }
 0x31c   : > { %1585 = vmatmul.mubr.msk.f32.vlgmr.msra.gmra.mrb[10].mxu0 %vm347_vm1, %v1504_v14 }
 0x3eb   : > { %v1055_v42 = vpop.f32.mrb[8].mxu0 }
 0x3ec   : > { %v1056_v43 = vadd.f32 %v1502_v41, %v1055_v42  ;;  %v1579_v44 = vpop.f32.mrb[9].mxu0 }
 0x3ee   : > { %v1059_v45 = vmax.f32 %v1056_v43, 0.0 }
 0x3ef   : > { %v1215_v1 = vpop.f32.mrb[10].mxu0 }
 0x3f0   : > { %v1305_v46 = vrot.slane %v1059_v45, 4  ;;  %v1221_v47 = vmul.f32 %v1513_v0, %v1215_v1  ;;  %v1586_v48 = vpop.f32.mrb[11].mxu0 }
 0x3f2   : > { %v1313_v49 = vsel %vm1312_vm5, %v1311_v30, %v1305_v46  ;;  %v1223_v50 = vadd.f32 %v1222_v40, %v1221_v47 }
 0x3f4   : > { %1588 = vmatpush3.msra.mxu1 %v1223_v50 }
 0x3f5   : > { %1590 = vmatmul.mubr.msk.f32.vlgmr.msra.gmra.mrb[10].mxu1 %vm503_vm3, %v2124_v37 }
 0x4c8   : > { %v1296_v52 = vpop.f32.mrb[10].mxu1 }
 0x4c9   : > { %v1297_v53 = vadd.f32 %v1517_v51, %v1296_v52  ;;  %v1591_v54 = vpop.f32.mrb[11].mxu1 }
 0x4cb   : > { %v1300_v55 = vmax.f32 %v1297_v53, 0.0 }
 0x4cd   : > { %v1308_v56 = vrot.slane %v1300_v55, 2 }
 0x4cf   : > { %v1315_v37 = vsel %vm1314_vm6, %v1313_v49, %v1308_v56 }
 0x4d0   : > { %1316 = vst [vmem:[%s308_s30] sm:$0xff] %v1315_v37 }
 0x4d1   : > { %1792 = shalt.err (!%p1789_p11)
}
 0x4d2   : > { %s1793_s14 = scalar_lea.hbm %s2194_s7, 128  ;;  %s1797_s9 = scalar_lea.hbm %s2242_s4, 256 }
 0x4d3   : > { %p1794_p4 = scmp.ne.s32.totalorder %s2194_s7, %s1793_s14  ;;  %p1798_p2 = scmp.lt.u32.totalorder %s2194_s7, %s2242_s4 }
 0x4d4   : > { %p1799_p1 = scmp.lt.u32.totalorder %s1797_s9, %s1793_s14  ;;  %p1801_p7 = scmp.lt.u32.totalorder %s1793_s14, %s2194_s7 }
 0x4d5   : > { %p1795_p3 = pnand %p1794_p4, %p2262_p6 }
 0x4d6   : > { %p1800_p13 = por %p1799_p1, %p1798_p2 }
 0x4d7   : > { %p1796_p5 = pneg %p1795_p3 }
 0x4d8   : > { %p1802_p9 = por %p1801_p7, %p1800_p13 }
 0x4da   : > { %p1803_p12 = pnand %p1802_p9, %p1796_p5 }
 0x4dc   : > { %1806 = shalt.err (!%p1803_p12)
}
 0x4dd   : > { %1632 = dma.vmem_to_hbm [thread:$0]  (%p2262_p6), %s2196_s0, 128, %s2194_s7, %s1318_s28  }
 0x4de PF: > { %s1343_s11 = sand.u32 1, %s1837_s15   ;;  %p2263_p0 = scmp.ne.s32.totalorder %s2251_s27, 0 }
 0x4df   : > { %p2264_p8 = scmp.ge.s32.totalorder %s1849_s18, 2  ;;  %s1344_s13 = scalar_lea.sflag [#allocation4], %s1343_s11 }
 0x4e1   : > { %p1645_p10 = pnand %p2264_p8, %p2263_p0 }
 0x4e3   : > { %1832 = dma.done.wait (!%p1645_p10), %s1344_s13, 128  }
 0x4e4   : > { %1834 = vsyncadd (!%p1645_p10), %s1344_s13, 4294967168  ;;  %p20_p11 = scmp.ge.s32.totalorder %s1912_s21, 4   ;;  %s2265_s15 = smov %s1841_s16 }
 0x4e5   : > { %s2266_s16 = smov %s1845_s17  ;;  %s2267_s17 = smov %s1924_s24 }
 0x4e6   : > { %s2268_s18 = smov %s1912_s21  ;;  %22 = sbr.rel (!%p20_p11) target bundleno = 10 (0xa), region = 120 }
 0x4ed   :  { %1349 = vsyncpa [#allocation3], 1 }
 0x4ee   :  { %1351 = vsyncpa [#allocation3 + $0x1], 1 }
 0x4ef   :  { %1352 = vsyncpa [#allocation6], 1 }
 0x4f0   :  { %1354 = vsyncpa [#allocation6 + $0x1], 1 }
 0x4f1   :  { %1355 = vsyncpa [#allocation4], 1 }
 0x4f2   :  { %1357 = vsyncpa [#allocation4 + $0x1], 1 }

</bundles_post_ra>
